<compile_context>
chip_gen: v7x
topology: tpu7x:2x2x1
jax: 0.10.0
libtpu: 0.0.40
codegen_flags: <defaults>
</compile_context>

<pallas_src>
import functools

import jax
import jax.numpy as jnp
from jax.experimental import pallas as pl
from jax.experimental.pallas import tpu as pltpu


ACT_DTYPE = jnp.bfloat16           # inter-layer activation dtype at kernel boundaries


def _detect_vmem_limit():
    """Generation-aware scoped-VMEM budget (bytes)."""
    mib = 1024 * 1024
    try:
        cap = int(pltpu.get_tpu_info().vmem_capacity_bytes)
    except Exception:
        cap = 0
    if cap and cap <= 64 * mib:
        return 48 * mib            # v7x-class: 64 MiB physical -> leave Mosaic headroom
    if cap >= 96 * mib:
        return 96 * mib            # v5e / v6e: 128 MiB physical -> raise scoped limit
    return 48 * mib                # unknown: conservative, safe on every generation


VMEM_LIMIT = _detect_vmem_limit()


def _cp(*sem):
    return pltpu.CompilerParams(dimension_semantics=sem, vmem_limit_bytes=VMEM_LIMIT)


def _pick_row_tile(m, row_bytes, fixed_bytes=0, preferred=512):
    """Largest row tile (divisor of m) whose estimated VMEM footprint fits the budget."""
    budget = int(0.6 * VMEM_LIMIT) - fixed_bytes
    fallback = None
    for t in (preferred, 256, 128, 64, 32, 16, 8):
        if t <= m and m % t == 0:
            if t * row_bytes <= budget:
                return t
            fallback = t           # keep shrinking until it fits
    return fallback if fallback is not None else m


def _dense_row_bytes(K, N, has_residual=False):
    # per output row: x tile (bf16 x2 buffers) + out tile (bf16 x2) + f32 intermediates
    rb = 2 * K * 2 + 2 * N * 2 + 2 * N * 4
    if has_residual:
        rb += 2 * N * 2
    return rb


def _pick_q_tile(S, preferred=256):
    for t in (preferred, 128, 64, 32, 16, 8):
        if t <= S and S % t == 0:
            return t
    return S


def _pick_batch_tile(B, bytes_per_seq):
    budget = int(0.6 * VMEM_LIMIT)
    fallback = None
    for t in (16, 8, 4, 2, 1):
        if t <= B and B % t == 0:
            if t * bytes_per_seq <= budget:
                return t
            fallback = t
    return fallback if fallback is not None else 1


# ----------------------------- Pallas kernels ------------------------------

def _dense_kernel(x_ref, w_ref, b_ref, o_ref, *, activation):
    y = jnp.dot(x_ref[...], w_ref[...], preferred_element_type=jnp.float32)
    y = y + b_ref[...]
    if activation == "gelu":
        # TODO(synk): HF BERT uses exact (erf) GELU; Mosaic-friendly tanh approx here.
        y = jax.nn.gelu(y, approximate=True)
    o_ref[...] = y.astype(o_ref.dtype)


def dense(x2d, w, b, activation=None, out_dtype=ACT_DTYPE):
    """y = act(x2d @ w + b); bf16 MXU inputs, f32 accumulate, bf16 out."""
    M, K = x2d.shape
    K2, N = w.shape
    assert K == K2
    rt = _pick_row_tile(M, _dense_row_bytes(K, N), fixed_bytes=2 * K * N * 2)
    kern = functools.partial(_dense_kernel, activation=activation)
    # TODO(synk): mark w/b specs pipeline_mode=pl.Buffered(1) (single-buffer the
    # constant-index operands) once confirmed on the target jax version; saves K*N*2 VMEM.
    return pl.pallas_call(
        kern,
        out_shape=jax.ShapeDtypeStruct((M, N), out_dtype),
        grid=(M // rt,),
        in_specs=[
            pl.BlockSpec((rt, K), lambda i: (i, 0)),
            pl.BlockSpec((K, N), lambda i: (0, 0)),      # weights stay VMEM-resident
            pl.BlockSpec((1, N), lambda i: (0, 0)),
        ],
        out_specs=pl.BlockSpec((rt, N), lambda i: (i, 0)),
        compiler_params=_cp("parallel"),
    )(x2d.astype(jnp.bfloat16), w.astype(jnp.bfloat16),
      b.reshape(1, N).astype(jnp.float32))


def _dense_res_ln_kernel(x_ref, w_ref, b_ref, r_ref, g_ref, bb_ref, o_ref, *, eps):
    y = jnp.dot(x_ref[...], w_ref[...], preferred_element_type=jnp.float32)
    y = y + b_ref[...] + r_ref[...].astype(jnp.float32)
    mean = jnp.mean(y, axis=-1, keepdims=True)
    var = jnp.mean((y - mean) ** 2, axis=-1, keepdims=True)
    yn = (y - mean) * jax.lax.rsqrt(var + eps)
    o_ref[...] = (yn * g_ref[...] + bb_ref[...]).astype(o_ref.dtype)


def dense_residual_layernorm(x2d, w, b, res2d, gamma, beta, eps=1e-12,
                             out_dtype=ACT_DTYPE):
    """LayerNorm(x2d @ w + b + res2d) fused in one kernel (single HBM pass)."""
    M, K = x2d.shape
    K2, N = w.shape
    assert K == K2 and res2d.shape == (M, N)
    rt = _pick_row_tile(M, _dense_row_bytes(K, N, has_residual=True),
                        fixed_bytes=2 * K * N * 2)
    kern = functools.partial(_dense_res_ln_kernel, eps=eps)
    return pl.pallas_call(
        kern,
        out_shape=jax.ShapeDtypeStruct((M, N), out_dtype),
        grid=(M // rt,),
        in_specs=[
            pl.BlockSpec((rt, K), lambda i: (i, 0)),
            pl.BlockSpec((K, N), lambda i: (0, 0)),
            pl.BlockSpec((1, N), lambda i: (0, 0)),
            pl.BlockSpec((rt, N), lambda i: (i, 0)),
            pl.BlockSpec((1, N), lambda i: (0, 0)),
            pl.BlockSpec((1, N), lambda i: (0, 0)),
        ],
        out_specs=pl.BlockSpec((rt, N), lambda i: (i, 0)),
        compiler_params=_cp("parallel"),
    )(x2d.astype(jnp.bfloat16), w.astype(jnp.bfloat16),
      b.reshape(1, N).astype(jnp.float32), res2d,
      gamma.reshape(1, N).astype(jnp.float32),
      beta.reshape(1, N).astype(jnp.float32))


def _layernorm_kernel(x_ref, g_ref, b_ref, o_ref, *, eps):
    x = x_ref[...].astype(jnp.float32)
    mean = jnp.mean(x, axis=-1, keepdims=True)
    var = jnp.mean((x - mean) ** 2, axis=-1, keepdims=True)
    y = (x - mean) * jax.lax.rsqrt(var + eps)
    o_ref[...] = (y * g_ref[...] + b_ref[...]).astype(o_ref.dtype)


def layernorm(x2d, gamma, beta, eps=1e-12, out_dtype=ACT_DTYPE):
    """LayerNorm over the last axis."""
    M, H = x2d.shape
    rt = _pick_row_tile(M, 16 * H)
    kern = functools.partial(_layernorm_kernel, eps=eps)
    return pl.pallas_call(
        kern,
        out_shape=jax.ShapeDtypeStruct((M, H), out_dtype),
        grid=(M // rt,),
        in_specs=[
            pl.BlockSpec((rt, H), lambda i: (i, 0)),
            pl.BlockSpec((1, H), lambda i: (0, 0)),
            pl.BlockSpec((1, H), lambda i: (0, 0)),
        ],
        out_specs=pl.BlockSpec((rt, H), lambda i: (i, 0)),
        compiler_params=_cp("parallel"),
    )(x2d, gamma.reshape(1, H).astype(jnp.float32),
      beta.reshape(1, H).astype(jnp.float32))


def _attention_kernel(q_ref, kv_ref, bias_ref, o_ref, *, num_heads, head_dim,
                      scale, q_packed):
    H = num_heads * head_dim
    # QKV slab stays bf16 throughout; only MXU results are f32 (no f32 round-trip).
    q2d = q_ref[0]                       # (Sq, H) or (Sq, 3H) when packed (toy widths)
    if q_packed:
        q2d = q2d[:, :H]
    kv = kv_ref[0]                       # (S, 3H) bf16
    k2d = kv[:, H:2 * H]
    v2d = kv[:, 2 * H:]
    bias = bias_ref[0]                   # (1, S) additive mask bias, f32

    # TODO(synk): switch to a KV-tiled online-softmax (flash) variant for S >= ~1024
    # so the (Sq, S) score buffer stays bounded on v7x's 64 MiB VMEM.
    # TODO(synk): fold the per-head loop into a single head-batched dot_general once
    # a heads-leading layout is available without an in-kernel major-dim transpose;
    # the MXU contraction depth (= head_dim) is inherent either way.
    for h in range(num_heads):
        sl = slice(h * head_dim, (h + 1) * head_dim)
        qh = q2d[:, sl]                                                  # (Sq, Dh) bf16
        kh = k2d[:, sl]                                                  # (S,  Dh) bf16
        vh = v2d[:, sl]                                                  # (S,  Dh) bf16
        s = jnp.einsum("qd,kd->qk", qh, kh,
                       preferred_element_type=jnp.float32) * scale       # (Sq, S) f32
        s = s + bias
        m = jnp.max(s, axis=-1, keepdims=True)
        p = jnp.exp(s - m)
        p = p * pl.reciprocal(jnp.sum(p, axis=-1, keepdims=True), approx=True)
        ctx = jnp.dot(p.astype(vh.dtype), vh,
                      preferred_element_type=jnp.float32)                # (Sq, Dh) f32
        # store straight into the lane slice of the output tile: no concat relayout,
        # no nH live ctx tensors.
        o_ref[0, :, sl] = ctx.astype(o_ref.dtype)


def fused_attention(qkv, mask_bias, num_heads, head_dim):
    """qkv: (B, S, 3H) bf16 lane-dense fused-QKV slab; mask_bias: (B, 1, S) f32.
    Returns (B, S, H) bf16 — lane-dense, no head transposes in HBM."""
    B, S, H3 = qkv.shape
    H = num_heads * head_dim
    assert H3 == 3 * H
    q_tile = _pick_q_tile(S)
    # Lane-dense Q slice needs H % 128 == 0; otherwise fall back to the packed slab.
    q_packed = (H % 128) != 0
    q_last = H3 if q_packed else H
    kern = functools.partial(_attention_kernel, num_heads=num_heads,
                             head_dim=head_dim, scale=1.0 / (head_dim ** 0.5),
                             q_packed=q_packed)
    return pl.pallas_call(
        kern,
        out_shape=jax.ShapeDtypeStruct((B, S, H), ACT_DTYPE),
        grid=(B, S // q_tile),
        in_specs=[
            # Q rows for this query tile.
            pl.BlockSpec((1, q_tile, q_last), lambda b, qi: (b, qi, 0)),
            # full (S, 3H) slab for K/V; constant index over qi -> fetched once per b.
            pl.BlockSpec((1, S, H3), lambda b, qi: (b, 0, 0)),
            pl.BlockSpec((1, 1, S), lambda b, qi: (b, 0, 0)),
        ],
        out_specs=pl.BlockSpec((1, q_tile, H), lambda b, qi: (b, qi, 0)),
        compiler_params=_cp("parallel", "arbitrary"),
    )(qkv, qkv, mask_bias)


def _pool_normalize_kernel(t_ref, m_ref, o_ref, *, do_normalize):
    t = t_ref[...].astype(jnp.float32)                 # (bt, S, H)
    m = m_ref[...]                                     # (bt, S) f32 mask
    summed = jnp.sum(t * m[:, :, None], axis=1)        # (bt, H) — VPU reduce over S
    denom = jnp.maximum(jnp.sum(m, axis=1, keepdims=True), 1e-9)
    if do_normalize:
        # approx reciprocal is free (EUP); its scale error cancels after L2 normalize.
        emb = summed * pl.reciprocal(denom, approx=True)
        norm = jnp.sqrt(jnp.sum(emb * emb, axis=-1, keepdims=True))
        emb = emb / jnp.maximum(norm, 1e-12)
    else:
        emb = summed / denom
    o_ref[...] = emb.astype(o_ref.dtype)


def mean_pool_normalize(token_embeddings, attention_mask, normalize=True):
    """Masked mean pooling (+ optional L2 normalize), tiled over batch."""
    B, S, H = token_embeddings.shape
    bt = _pick_batch_tile(B, bytes_per_seq=S * H * (2 * 2 + 4))
    kern = functools.partial(_pool_normalize_kernel, do_normalize=normalize)
    return pl.pallas_call(
        kern,
        out_shape=jax.ShapeDtypeStruct((B, H), jnp.float32),
        grid=(B // bt,),
        in_specs=[
            pl.BlockSpec((bt, S, H), lambda i: (i, 0, 0)),
            pl.BlockSpec((bt, S), lambda i: (i, 0)),
        ],
        out_specs=pl.BlockSpec((bt, H), lambda i: (i, 0)),
        compiler_params=_cp("parallel"),
    )(token_embeddings, attention_mask.astype(jnp.float32))


# ----------------------------- Model (glue in JAX) -------------------------

CFG = dict(vocab=100, max_pos=16, type_vocab=2, hidden=32, heads=4,
           intermediate=64, layers=2)


def init_params(key, cfg):
    H, I = cfg["hidden"], cfg["intermediate"]
    ks = iter(jax.random.split(key, 64))

    def w(shape, scale=0.02, dtype=jnp.float32):
        return (scale * jax.random.normal(next(ks), shape)).astype(dtype)

    params = {
        "word_emb": w((cfg["vocab"], H)),
        "pos_emb": w((cfg["max_pos"], H)),
        "type_emb": w((cfg["type_vocab"], H)),
        "emb_ln_g": jnp.ones((H,), jnp.float32),
        "emb_ln_b": jnp.zeros((H,), jnp.float32),
        "layers": [],
    }
    for _ in range(cfg["layers"]):
        params["layers"].append({
            # matmul weights pre-cast to bf16 once (no per-forward convert pass)
            "qkv_w": w((H, 3 * H), dtype=jnp.bfloat16),
            "qkv_b": jnp.zeros((3 * H,), jnp.float32),
            "o_w": w((H, H), dtype=jnp.bfloat16),
            "o_b": jnp.zeros((H,), jnp.float32),
            "ln1_g": jnp.ones((H,), jnp.float32), "ln1_b": jnp.zeros((H,), jnp.float32),
            "ff1_w": w((H, I), dtype=jnp.bfloat16),
            "ff1_b": jnp.zeros((I,), jnp.float32),
            "ff2_w": w((I, H), dtype=jnp.bfloat16),
            "ff2_b": jnp.zeros((H,), jnp.float32),
            "ln2_g": jnp.ones((H,), jnp.float32), "ln2_b": jnp.zeros((H,), jnp.float32),
        })
    return params


def sentence_embedding_forward(params, input_ids, token_type_ids, attention_mask,
                               cfg=CFG, normalize=True):
    B, S = input_ids.shape
    H, nH = cfg["hidden"], cfg["heads"]
    Dh = H // nH

    # --- embeddings (table lookups are glue; LayerNorm is a Pallas kernel) ---
    pos_ids = jnp.arange(S)[None, :]
    emb = (params["word_emb"][input_ids]
           + params["pos_emb"][pos_ids]
           + params["type_emb"][token_type_ids])                      # (B, S, H) f32
    # cast before the pallas_call: XLA fuses gather+add+convert so the HBM
    # intermediate feeding the first kernel is bf16.
    x2d = layernorm(emb.reshape(B * S, H).astype(ACT_DTYPE),
                    params["emb_ln_g"], params["emb_ln_b"])           # (B*S, H) bf16

    # additive attention-mask bias (B, 1, S)
    mask_f = attention_mask.astype(jnp.float32)
    mask_bias = ((1.0 - mask_f) * -1e9).reshape(B, 1, S)

    for lyr in params["layers"]:
        # TODO(synk): on v5e/v6e (128 MiB VMEM) fuse the QKV projection into the
        # attention kernel to avoid the (B,S,3H) HBM round-trip.
        qkv = dense(x2d, lyr["qkv_w"], lyr["qkv_b"]).reshape(B, S, 3 * H)
        ctx2d = fused_attention(qkv, mask_bias, nH, Dh).reshape(B * S, H)

        # attention output projection + residual + LayerNorm fused into one kernel
        x2d = dense_residual_layernorm(ctx2d, lyr["o_w"], lyr["o_b"], x2d,
                                       lyr["ln1_g"], lyr["ln1_b"])

        # FFN: H -> I (gelu), then I -> H + residual + LayerNorm fused
        ff = dense(x2d, lyr["ff1_w"], lyr["ff1_b"], activation="gelu")
        x2d = dense_residual_layernorm(ff, lyr["ff2_w"], lyr["ff2_b"], x2d,
                                       lyr["ln2_g"], lyr["ln2_b"])

    token_embeddings = x2d.reshape(B, S, H)                           # model_output[0]
    return mean_pool_normalize(token_embeddings, attention_mask, normalize=normalize)


# ----------------------------------- main -----------------------------------

if __name__ == "__main__":
    key = jax.random.PRNGKey(0)
    k_param, k_ids = jax.random.split(key)

    params = init_params(k_param, CFG)

    B, S = 2, 8
    input_ids = jax.random.randint(k_ids, (B, S), 0, CFG["vocab"], dtype=jnp.int32)
    token_type_ids = jnp.zeros((B, S), jnp.int32)
    # example padding: sequence 0 full length, sequence 1 has 5 real tokens
    lengths = jnp.array([8, 5], dtype=jnp.int32)
    attention_mask = (jnp.arange(S)[None, :] < lengths[:, None]).astype(jnp.int32)

    emb = sentence_embedding_forward(params, input_ids, token_type_ids,
                                     attention_mask, normalize=True)
    emb = jax.block_until_ready(emb)

    assert emb.shape == (B, CFG["hidden"])
    assert bool(jnp.all(jnp.isfinite(emb)))
    # L2-normalized rows should have unit norm
    norms = jnp.sqrt(jnp.sum(emb * emb, axis=-1))
    assert bool(jnp.all(jnp.abs(norms - 1.0) < 1e-4))
    print("KERNEL_OK")
</pallas_src>

<mosaic_0001>
module attributes {stable_mosaic.version = 11 : i64} {
  func.func @_layernorm_kernel(%arg0: i32, %arg1: memref<16x32xbf16, #tpu.memory_space<vmem>>, %arg2: memref<1x32xf32, #tpu.memory_space<vmem>>, %arg3: memref<1x32xf32, #tpu.memory_space<vmem>>, %arg4: memref<16x32xbf16, #tpu.memory_space<vmem>>) attributes {dimension_semantics = [#tpu.dimension_semantics<parallel>], iteration_bounds = array<i64: 1>, scalar_prefetch = 0 : i64, scratch_operands = 0 : i64, tpu.core_type = #tpu.core_type<tc>, window_params = [{transform_indices = @transform_0, window_bounds = array<i64: 16, 32>}, {pipeline_mode = #tpu.pipeline_mode<synchronous>, transform_indices = @transform_1, window_bounds = array<i64: 1, 32>}, {pipeline_mode = #tpu.pipeline_mode<synchronous>, transform_indices = @transform_2, window_bounds = array<i64: 1, 32>}, {transform_indices = @transform_3, window_bounds = array<i64: 16, 32>}]} {
    %c0 = arith.constant 0 : index
    %c0_0 = arith.constant 0 : index
    %0 = vector.load %arg1[%c0, %c0_0] : memref<16x32xbf16, #tpu.memory_space<vmem>>, vector<16x32xbf16>
    %1 = arith.extf %0 : vector<16x32xbf16> to vector<16x32xf32>
    %cst = arith.constant dense<0.000000e+00> : vector<16xf32>
    %2 = vector.multi_reduction <add>, %1, %cst [1] : vector<16x32xf32> to vector<16xf32>
    %3 = vector.shape_cast %2 : vector<16xf32> to vector<16x1xf32>
    %cst_1 = arith.constant 3.200000e+01 : f32
    %4 = vector.broadcast %cst_1 : f32 to vector<16x1xf32>
    %5 = arith.divf %3, %4 : vector<16x1xf32>
    %6 = vector.broadcast %5 : vector<16x1xf32> to vector<16x32xf32>
    %7 = arith.subf %1, %6 : vector<16x32xf32>
    %8 = arith.mulf %7, %7 : vector<16x32xf32>
    %cst_2 = arith.constant dense<0.000000e+00> : vector<16xf32>
    %9 = vector.multi_reduction <add>, %8, %cst_2 [1] : vector<16x32xf32> to vector<16xf32>
    %10 = vector.shape_cast %9 : vector<16xf32> to vector<16x1xf32>
    %cst_3 = arith.constant 3.200000e+01 : f32
    %11 = vector.broadcast %cst_3 : f32 to vector<16x1xf32>
    %12 = arith.divf %10, %11 : vector<16x1xf32>
    %13 = vector.broadcast %5 : vector<16x1xf32> to vector<16x32xf32>
    %14 = arith.subf %1, %13 : vector<16x32xf32>
    %cst_4 = arith.constant 9.99999996E-13 : f32
    %15 = vector.broadcast %cst_4 : f32 to vector<16x1xf32>
    %16 = arith.addf %12, %15 : vector<16x1xf32>
    %17 = math.rsqrt %16 : vector<16x1xf32>
    %18 = vector.broadcast %17 : vector<16x1xf32> to vector<16x32xf32>
    %19 = arith.mulf %14, %18 : vector<16x32xf32>
    %c0_5 = arith.constant 0 : index
    %c0_6 = arith.constant 0 : index
    %20 = vector.load %arg2[%c0_5, %c0_6] : memref<1x32xf32, #tpu.memory_space<vmem>>, vector<1x32xf32>
    %21 = vector.broadcast %20 : vector<1x32xf32> to vector<16x32xf32>
    %22 = arith.mulf %19, %21 : vector<16x32xf32>
    %c0_7 = arith.constant 0 : index
    %c0_8 = arith.constant 0 : index
    %23 = vector.load %arg3[%c0_7, %c0_8] : memref<1x32xf32, #tpu.memory_space<vmem>>, vector<1x32xf32>
    %24 = vector.broadcast %23 : vector<1x32xf32> to vector<16x32xf32>
    %25 = arith.addf %22, %24 : vector<16x32xf32>
    %26 = arith.truncf %25 : vector<16x32xf32> to vector<16x32xbf16>
    %c0_9 = arith.constant 0 : index
    %c0_10 = arith.constant 0 : index
    %27 = vector.load %arg4[%c0_9, %c0_10] : memref<16x32xbf16, #tpu.memory_space<vmem>>, vector<16x32xbf16>
    tpu.vector_store %arg4[%c0_9, %c0_10], %26 {strides = array<i32>} : memref<16x32xbf16, #tpu.memory_space<vmem>>, vector<16x32xbf16>,
    return
  }
  func.func @transform_0(%arg0: i32) -> (i32, i32) {
    %c0_i32 = arith.constant 0 : i32
    %c0_i32_0 = arith.constant 0 : i32
    return %arg0, %c0_i32 : i32, i32
  }
  func.func @transform_1(%arg0: i32) -> (i32, i32) {
    %c0_i32 = arith.constant 0 : i32
    %c0_i32_0 = arith.constant 0 : i32
    %c0_i32_1 = arith.constant 0 : i32
    return %c0_i32, %c0_i32_0 : i32, i32
  }
  func.func @transform_2(%arg0: i32) -> (i32, i32) {
    %c0_i32 = arith.constant 0 : i32
    %c0_i32_0 = arith.constant 0 : i32
    %c0_i32_1 = arith.constant 0 : i32
    return %c0_i32, %c0_i32_0 : i32, i32
  }
  func.func @transform_3(%arg0: i32) -> (i32, i32) {
    %c0_i32 = arith.constant 0 : i32
    %c0_i32_0 = arith.constant 0 : i32
    return %arg0, %c0_i32 : i32, i32
  }
}

</mosaic_0001>

<bundles_post_ra>
// kernel: tpu_custom_call.1
= control target key start
LH: loop header
LB: loop body
LE: loop exit
PB: predicated region body
PF: predicated region fallthrough
CT: control target
= control target key end

     0   :  { %8 = vsyncpa [#allocation3], 0  ;;  %s237_s0 = inlined_call_operand.hbm [shape: bf16[16,32], index: 0, kind: input, shape index: {}]   ;;  %s238_s1 = inlined_call_operand.vmem [shape: f32[1,32], index: 1, kind: input, shape index: {}]   ;;  %s239_s2 = inlined_call_operand.vmem [shape: f32[1,32], index: 2, kind: input, shape index: {}]   ;;  %s240_s3 = inlined_call_operand.hbm [shape: bf16[16,32], index: 3, kind: output, shape index: {}]  }
   0x1   :  { %9 = vsyncpa [#allocation4], 0  ;;  %s173_s12 = smov [#allocation2]   ;;  %s125_s16 = scalar_lea.hbm %s237_s0, 128 }
   0x2   :  { %s15_s13 = sshll.u32 %s173_s12, 4  ;;  %p126_p0 = scmp.ne.s32.totalorder %s237_s0, %s125_s16  ;;  %s16_s13 = int_to_ptr.vmem [resolvable:$true] %s15_s13 }
   0x3   :  { %p129_p1 = scmp.lt.u32.totalorder %s125_s16, %s237_s0 }
   0x5   :  { %p131_p2 = pnand %p129_p1, %p126_p0 }
   0x7   :  { %134 = shalt.err (!%p131_p2)
}
   0x8   :  { %s135_s21 = scalar_lea.vmem %s16_s13, 128  ;;  %p140_p4 = scmp.lt.s32.totalorder %s16_s13, %s16_s13 }
   0x9   :  { %p136_p3 = scmp.ne.s32.totalorder %s16_s13, %s135_s21  ;;  %p141_p5 = scmp.lt.s32.totalorder %s135_s21, %s135_s21 }
   0xb   :  { %p142_p6 = por %p141_p5, %p140_p4 }
   0xd   :  { %p143_p7 = pnand %p142_p6, %p136_p3 }
   0xf   :  { %146 = shalt.err (!%p143_p7)
}
  0x10   :  { %s174_s22 = smov 64   ;;  %s175_s23 = smov 4  }
  0x11   :  { %21 = dma.hbm_to_vmem [thread:$0]  %s237_s0, 128, %s16_s13, [#allocation3], %s174_s22, %s174_s22, %s175_s23  }
  0x12   :  { %169 = dma.done.wait [#allocation3], 128  }
  0x13   :  { %170 = vsyncadd [#allocation3], 4294967168  ;;  %v114_v0 = vld [vmem:[#allocation2] sm:$0xff]   ;;  %vm33_vm0 = vcmask 261120   ;;  %vm87_vm1 = vcmask 257024   ;;  %s176_s29 = smov [#allocation5]  }
  0x14   :  { %v115_v1 = vunpack.c.l.bf16 %v114_v0  ;;  %v116_v2 = vunpack.c.h.bf16 %v114_v0  ;;  %v107_v22 = vld [vmem:[%s238_s1] ss:$0 sm:$0xff]  ;;  %s95_s30 = sshll.u32 %s176_s29, 4  ;;  %s96_s30 = int_to_ptr.vmem [resolvable:$true] %s95_s30 }
  0x15   :  { %v108_v24 = vld [vmem:[%s239_s2] ss:$0 sm:$0xff]  ;;  %s147_s1 = scalar_lea.vmem %s96_s30, 128  ;;  %p152_p9 = scmp.lt.s32.totalorder %s96_s30, %s96_s30 }
  0x16   :  { %v34_v3 = vsel %vm33_vm0, %v115_v1, 0.0  ;;  %v37_v4 = vsel %vm33_vm0, %v116_v2, 0.0  ;;  %p148_p8 = scmp.ne.s32.totalorder %s96_s30, %s147_s1  ;;  %p153_p10 = scmp.lt.s32.totalorder %s147_s1, %s147_s1 }
  0x17   :  { %35 = vadd.xlane.f32.xlu0 %v34_v3 }
  0x18   :  { %p154_p11 = por %p153_p10, %p152_p9 }
  0x1a   :  { %p155_p12 = pnand %p154_p11, %p148_p8 }
  0x1b   :  { %38 = vadd.xlane.f32.xlu0 %v37_v4 }
  0xa4   :  { %v36_v5 = vpop.xlane.xlu0 %35 }
  0xa5   :  { %v41_v6 = vmul.f32 0.03125, %v36_v5 }
  0xa7   :  { %v43_v7 = vsub.f32 %v115_v1, %v41_v6 }
  0xa8   :  { %v39_v8 = vpop.xlane.xlu0 %38 }
  0xa9   :  { %v42_v9 = vmul.f32 0.03125, %v39_v8  ;;  %v45_v10 = vmul.f32 %v43_v7, %v43_v7 }
  0xab   :  { %v44_v11 = vsub.f32 %v116_v2, %v42_v9  ;;  %v47_v12 = vsel %vm33_vm0, %v45_v10, 0.0 }
  0xac   :  { %48 = vadd.xlane.f32.xlu1 %v47_v12 }
  0xad   :  { %v46_v13 = vmul.f32 %v44_v11, %v44_v11 }
  0xaf   :  { %v50_v14 = vsel %vm33_vm0, %v46_v13, 0.0 }
  0xb0   :  { %51 = vadd.xlane.f32.xlu1 %v50_v14 }
 0x139   :  { %v49_v15 = vpop.xlane.xlu1 %48 }
 0x13a   :  { %v53_v16 = vmul.f32 0.03125, %v49_v15 }
 0x13c   :  { %v55_v17 = vadd.f32 1e-12, %v53_v16 }
 0x13d   :  { %v52_v18 = vpop.xlane.xlu1 %51 }
 0x13e   :  { %121 = vrsqrt.f32 %v55_v17  ;;  %v54_v19 = vmul.f32 0.03125, %v52_v18 }
 0x140   :  { %v56_v20 = vadd.f32 1e-12, %v54_v19 }
 0x142   :  { %123 = vrsqrt.f32 %v56_v20 }
 0x148   :  { %v122_v21 = vpop.eup %121 }
 0x149   :  { %v59_v23 = vmul.f32 %v122_v21, %v43_v7 }
 0x14b   :  { %v68_v25 = vmul.f32 %v107_v22, %v59_v23 }
 0x14c   :  { %v124_v26 = vpop.eup %123 }
 0x14d   :  { %v60_v27 = vmul.f32 %v124_v26, %v44_v11  ;;  %v77_v28 = vadd.f32 %v108_v24, %v68_v25 }
 0x14f   :  { %v69_v29 = vmul.f32 %v107_v22, %v60_v27  ;;  %v111_v30 = vpack.c.bf16 %v77_v28, %v77_v28 }
 0x151   :  { %v78_v31 = vadd.f32 %v108_v24, %v69_v29  ;;  %88 = vst.msk [vmem:[#allocation5] sm:$0xf] %vm87_vm1, %v111_v30 }
 0x153   :  { %v112_v32 = vpack.c.bf16 %v78_v31, %v78_v31 }
 0x155   :  { %89 = vst.msk [vmem:[#allocation5 + $0x4] sm:$0xf] %vm87_vm1, %v112_v32 }
 0x156   :  { %158 = shalt.err (!%p155_p12)
}
 0x157   :  { %s159_s5 = scalar_lea.hbm %s240_s3, 128 }
 0x158   :  { %p160_p13 = scmp.ne.s32.totalorder %s240_s3, %s159_s5  ;;  %p163_p0 = scmp.lt.u32.totalorder %s159_s5, %s240_s3 }
 0x15a   :  { %p165_p1 = pnand %p163_p0, %p160_p13 }
 0x15c   :  { %168 = shalt.err (!%p165_p1)
}
 0x15d   :  { %101 = dma.vmem_to_hbm [thread:$0]  %s96_s30, 128, %s240_s3, [#allocation4], %s174_s22, %s174_s22, %s175_s23  }
 0x15e   :  { %171 = dma.done.wait [#allocation4], 128  }
 0x15f   :  { %172 = vsyncadd [#allocation4], 4294967168 }
 0x160   :  { %105 = vsyncpa [#allocation3], 1 }
 0x161   :  { %106 = vsyncpa [#allocation4], 1 }

</bundles_post_ra>
